<compile_context>
chip_gen: v7x
topology: tpu7x:2x2x1
jax: 0.10.0
libtpu: 0.0.40
codegen_flags: <defaults>
</compile_context>

<pallas_src>
import functools

import jax
import jax.numpy as jnp
import numpy as np
from jax.experimental import pallas as pl
from jax.experimental.pallas import tpu as pltpu


# ----------------------------------------------------------------------------
# Interpolation matrices (built once, cached, in numpy — no per-call jnp work)
# ----------------------------------------------------------------------------
def _interp_matrix_np(n_in: int, n_out: int) -> np.ndarray:
    """Dense (n_out, n_in) bilinear interpolation matrix, align_corners=True."""
    if n_out == 1:
        src = np.zeros((1,), dtype=np.float32)
    else:
        src = np.arange(n_out, dtype=np.float32) * (n_in - 1) / (n_out - 1)
    i0 = np.clip(np.floor(src).astype(np.int64), 0, n_in - 1)
    i1 = np.minimum(i0 + 1, n_in - 1)
    frac = (src - i0).astype(np.float32)
    m = np.zeros((n_out, n_in), dtype=np.float32)
    m[np.arange(n_out), i0] += 1.0 - frac
    m[np.arange(n_out), i1] += frac
    return m


@functools.lru_cache(maxsize=None)
def _fused_interp_matrix(h_in: int, w_in: int, scale: int) -> np.ndarray:
    """Kt[(hi*Wi+wi), (ho*Wo+wo)] = Uh[ho,hi] * Uw[wo,wi]  — shape (Si, So)."""
    uh = _interp_matrix_np(h_in, h_in * scale)   # (Ho, Hi)
    uw = _interp_matrix_np(w_in, w_in * scale)   # (Wo, Wi)
    return np.ascontiguousarray(np.kron(uh, uw).T.astype(np.float32))


# ----------------------------------------------------------------------------
# Kernel
# ----------------------------------------------------------------------------
def _make_kernel(interp_first: bool):
    def kernel(x_ref, w_ref, kt_ref, o_ref):
        # x_ref : (1, B_blk*C_in,  Si)  flattened NCHW chunk (batch folded into M)
        # w_ref : (B_blk*C_out, B_blk*C_in)  block-diagonal 1x1 conv weight
        # kt_ref: (Si, So)              fused bilinear interp matrix (resident)
        # o_ref : (1, B_blk*C_out, So)  lane-dense flattened NCHW output slab
        x = x_ref[0]
        w = w_ref[...]
        kt = kt_ref[...]
        if interp_first:
            # Interp matmul fed with the smaller channel dim (C_in < C_out).
            up = jnp.dot(x, kt, preferred_element_type=jnp.float32)   # (Bb*Cin, So)
            y = jnp.dot(w, up, preferred_element_type=jnp.float32)    # (Bb*Cout, So)
        else:
            # Conv first when C_out <= C_in (4x fewer conv MACs at low res).
            y = jnp.dot(w, x, preferred_element_type=jnp.float32)     # (Bb*Cout, Si)
            y = jnp.dot(y, kt, preferred_element_type=jnp.float32)    # (Bb*Cout, So)
        # Fused ReLU + unmasked full-lane store (So is a multiple of 128 here).
        o_ref[0] = jnp.maximum(y, 0.0).astype(o_ref.dtype)

    return kernel


# ----------------------------------------------------------------------------
# Batch-chunk heuristic
# ----------------------------------------------------------------------------
def _pick_batch_block(batch: int, c_feed: int, c_other: int, s_conv: int) -> int:
    """Images folded per grid step.

    Constraints:
      * keep >= 2 grid steps when batch >= 2 (v7x: 2 TensorCores, axis is
        "parallel"; v5e/v6e don't care),
      * folded M = b_blk * c_feed <= 256 (one MXU pass on v6e/v7x),
      * block-diagonal conv MAC overhead (b_blk * c_other / s_conv) <= 1/2,
      * b_blk divides batch so every grid step sees a full chunk.
    """
    if batch <= 1:
        return 1
    cap = min(
        batch // 2,
        max(1, 256 // max(c_feed, 1)),
        max(1, s_conv // (2 * max(c_other, 1))),
    )
    cap = max(cap, 1)
    for d in range(cap, 0, -1):
        if batch % d == 0:
            return d
    return 1


# ----------------------------------------------------------------------------
# Wrapper
# ----------------------------------------------------------------------------
def pam_upsamper(x: jnp.ndarray, conv_w: jnp.ndarray, scale: int = 2) -> jnp.ndarray:
    """x: (B, C_in, H, W) NCHW.  conv_w: (C_out, C_in) 1x1 conv weight (bias=False)."""
    B, C_in, Hi, Wi = x.shape
    C_out = conv_w.shape[0]
    Ho, Wo = Hi * scale, Wi * scale
    Si, So = Hi * Wi, Ho * Wo

    # Order: feed the dominant (Si x So) interp matmul with the smaller channel dim.
    interp_first = C_in <= C_out
    if interp_first:
        c_feed, c_other, s_conv = C_in, C_out, Si
    else:
        c_feed, c_other, s_conv = C_out, C_in, So

    b_blk = _pick_batch_block(B, c_feed, c_other, s_conv)
    n_chunks = B // b_blk

    # Cached fused bilinear interp matrix (built in numpy once per (Hi, Wi, scale)).
    kt = jnp.asarray(_fused_interp_matrix(Hi, Wi, scale))          # (Si, So) f32

    # Block-diagonal 1x1 conv weight so the conv over a whole chunk is one 2-D matmul.
    if b_blk > 1:
        w_bd = jnp.kron(jnp.eye(b_blk, dtype=conv_w.dtype), conv_w)
    else:
        w_bd = conv_w                                               # (C_out, C_in)

    # Free contiguous reshape of NCHW: (B, C_in, Hi, Wi) -> (n_chunks, b_blk*C_in, Si).
    x_chunks = x.reshape(n_chunks, b_blk * C_in, Si)

    # Advisory cost estimate (helps XLA overlap the surrounding graph).
    if interp_first:
        macs = B * C_in * Si * So + B * b_blk * C_out * C_in * So
    else:
        macs = B * C_out * Si * So + B * b_blk * C_out * C_in * Si
    itemsize = jnp.dtype(x.dtype).itemsize
    bytes_accessed = (
        B * C_in * Si * itemsize            # x
        + int(w_bd.size) * 4                # conv weight
        + Si * So * 4                       # Kt
        + B * C_out * So * itemsize         # output
    )

    # VMEM budget: Kt + W single-buffered, x/out blocks double-buffered, f32 intermediates.
    x_blk_bytes = b_blk * C_in * Si * itemsize
    out_blk_bytes = b_blk * C_out * So * itemsize
    interm_bytes = b_blk * max(C_in, C_out) * So * 4
    est = (Si * So * 4 + int(w_bd.size) * 4
           + 2 * (x_blk_bytes + out_blk_bytes) + 2 * interm_bytes)
    vmem_limit = int(min(100 * 2**20, max(32 * 2**20, 2 * est)))

    out_chunks = pl.pallas_call(
        _make_kernel(interp_first),
        out_shape=jax.ShapeDtypeStruct((n_chunks, b_blk * C_out, So), x.dtype),
        grid_spec=pltpu.PrefetchScalarGridSpec(
            num_scalar_prefetch=0,
            grid=(n_chunks,),
            in_specs=[
                pl.BlockSpec((1, b_blk * C_in, Si), lambda i: (i, 0, 0)),
                # Resident operands: constant index map + single buffering
                # (no re-DMA across steps, half the VMEM footprint).
                pl.BlockSpec(tuple(w_bd.shape), lambda i: (0, 0),
                             pipeline_mode=pl.Buffered(buffer_count=1)),
                pl.BlockSpec((Si, So), lambda i: (0, 0),
                             pipeline_mode=pl.Buffered(buffer_count=1)),
            ],
            out_specs=pl.BlockSpec((1, b_blk * C_out, So), lambda i: (i, 0, 0)),
        ),
        compiler_params=pltpu.CompilerParams(
            dimension_semantics=("parallel",),   # chunks split across TCs on v7x
            vmem_limit_bytes=vmem_limit,
        ),
        cost_estimate=pl.CostEstimate(
            flops=2 * macs, transcendentals=0, bytes_accessed=bytes_accessed),
    )(x_chunks, w_bd, kt)

    # Free contiguous reshape back to NCHW.
    return out_chunks.reshape(B, C_out, Ho, Wo)


# ----------------------------------------------------------------------------
# Pure-JAX reference: bilinear upsample (align_corners=True) + 1x1 conv + relu
# ----------------------------------------------------------------------------
def _reference(x, conv_w, scale=2):
    B, C, Hi, Wi = x.shape
    uh = jnp.asarray(_interp_matrix_np(Hi, Hi * scale))
    uw = jnp.asarray(_interp_matrix_np(Wi, Wi * scale))
    up = jnp.einsum("hi,bciw->bchw", uh, x.astype(jnp.float32))
    up = jnp.einsum("bchi,oi->bcho", up, uw)
    y = jnp.einsum("oc,bchw->bohw", conv_w.astype(jnp.float32), up)
    return jnp.maximum(y, 0.0).astype(x.dtype)


if __name__ == "__main__":
    key = jax.random.PRNGKey(0)
    kx, kw = jax.random.split(key)

    B, C_in, H, W = 2, 4, 16, 16
    C_out, scale = 8, 2

    x = jax.random.normal(kx, (B, C_in, H, W), dtype=jnp.float32)
    # Deterministic Kaiming-normal init for the 1x1 conv weight (fan_in = C_in*1*1).
    fan_in = C_in
    conv_w = jax.random.normal(kw, (C_out, C_in), dtype=jnp.float32) * jnp.sqrt(2.0 / fan_in)

    out = pam_upsamper(x, conv_w, scale=scale)
    out = jax.block_until_ready(out)

    ref = _reference(x, conv_w, scale=scale)
    np.testing.assert_allclose(np.asarray(out), np.asarray(ref), rtol=1e-4, atol=1e-4)

    print("KERNEL_OK")
</pallas_src>

<mosaic_0001>
module attributes {stable_mosaic.version = 11 : i64} {
  func.func @kernel(%arg0: i32, %arg1: memref<1x4x256xf32, #tpu.memory_space<vmem>>, %arg2: memref<8x4xf32, #tpu.memory_space<vmem>>, %arg3: memref<256x1024xf32, #tpu.memory_space<vmem>>, %arg4: memref<1x8x1024xf32, #tpu.memory_space<vmem>>) attributes {dimension_semantics = [#tpu.dimension_semantics<parallel>], iteration_bounds = array<i64: 2>, scalar_prefetch = 0 : i64, scratch_operands = 0 : i64, tpu.core_type = #tpu.core_type<tc>, window_params = [{transform_indices = @transform_0, window_bounds = array<i64: 1, 4, 256>}, {pipeline_mode = #tpu.pipeline_mode<synchronous>, transform_indices = @transform_1, window_bounds = array<i64: 8, 4>}, {pipeline_mode = #tpu.pipeline_mode<synchronous>, transform_indices = @transform_2, window_bounds = array<i64: 256, 1024>}, {transform_indices = @transform_3, window_bounds = array<i64: 1, 8, 1024>}]} {
    %c0 = arith.constant 0 : index
    %c0_0 = arith.constant 0 : index
    %c0_1 = arith.constant 0 : index
    %0 = vector.load %arg1[%c0, %c0_0, %c0_1] : memref<1x4x256xf32, #tpu.memory_space<vmem>>, vector<1x4x256xf32>
    %1 = vector.shape_cast %0 : vector<1x4x256xf32> to vector<4x256xf32>
    %c0_2 = arith.constant 0 : index
    %c0_3 = arith.constant 0 : index
    %2 = vector.load %arg2[%c0_2, %c0_3] : memref<8x4xf32, #tpu.memory_space<vmem>>, vector<8x4xf32>
    %c0_4 = arith.constant 0 : index
    %c0_5 = arith.constant 0 : index
    %3 = vector.load %arg3[%c0_4, %c0_5] : memref<256x1024xf32, #tpu.memory_space<vmem>>, vector<256x1024xf32>
    %cst = arith.constant dense<0.000000e+00> : vector<4x1024xf32>
    %4 = tpu.matmul %1, %3, %cst {dimension_numbers = #tpu.dot_dimension_numbers<[1], [0], [0], [1], [0, 0, 1, 1], [], []>} : vector<4x256xf32>, vector<256x1024xf32>, vector<4x1024xf32> -> vector<4x1024xf32>
    %cst_6 = arith.constant dense<0.000000e+00> : vector<8x1024xf32>
    %5 = tpu.matmul %2, %4, %cst_6 {dimension_numbers = #tpu.dot_dimension_numbers<[1], [0], [0], [1], [0, 0, 1, 1], [], []>} : vector<8x4xf32>, vector<4x1024xf32>, vector<8x1024xf32> -> vector<8x1024xf32>
    %cst_7 = arith.constant 0.000000e+00 : f32
    %6 = vector.broadcast %cst_7 : f32 to vector<8x1024xf32>
    %7 = arith.maximumf %5, %6 : vector<8x1024xf32>
    %c0_8 = arith.constant 0 : index
    %c0_9 = arith.constant 0 : index
    %c0_10 = arith.constant 0 : index
    %8 = vector.load %arg4[%c0_8, %c0_9, %c0_10] : memref<1x8x1024xf32, #tpu.memory_space<vmem>>, vector<1x8x1024xf32>
    %9 = vector.shape_cast %8 : vector<1x8x1024xf32> to vector<8x1024xf32>
    %10 = vector.shape_cast %7 : vector<8x1024xf32> to vector<1x8x1024xf32>
    tpu.vector_store %arg4[%c0_8, %c0_9, %c0_10], %10 {strides = array<i32>} : memref<1x8x1024xf32, #tpu.memory_space<vmem>>, vector<1x8x1024xf32>,
    return
  }
  func.func @transform_0(%arg0: i32) -> (i32, i32, i32) {
    %c0_i32 = arith.constant 0 : i32
    %c0_i32_0 = arith.constant 0 : i32
    %c0_i32_1 = arith.constant 0 : i32
    return %arg0, %c0_i32, %c0_i32_0 : i32, i32, i32
  }
  func.func @transform_1(%arg0: i32) -> (i32, i32) {
    %c0_i32 = arith.constant 0 : i32
    %c0_i32_0 = arith.constant 0 : i32
    %c0_i32_1 = arith.constant 0 : i32
    return %c0_i32, %c0_i32_0 : i32, i32
  }
  func.func @transform_2(%arg0: i32) -> (i32, i32) {
    %c0_i32 = arith.constant 0 : i32
    %c0_i32_0 = arith.constant 0 : i32
    %c0_i32_1 = arith.constant 0 : i32
    return %c0_i32, %c0_i32_0 : i32, i32
  }
  func.func @transform_3(%arg0: i32) -> (i32, i32, i32) {
    %c0_i32 = arith.constant 0 : i32
    %c0_i32_0 = arith.constant 0 : i32
    %c0_i32_1 = arith.constant 0 : i32
    return %arg0, %c0_i32, %c0_i32_0 : i32, i32, i32
  }
}

</mosaic_0001>

<bundles_post_ra>
// kernel: tpu_custom_call.1
= control target key start
LH: loop header
LB: loop body
LE: loop exit
PB: predicated region body
PF: predicated region fallthrough
CT: control target
= control target key end

     0   :  { %8 = vsyncpa [#allocation3], 0  ;;  %s1903_s0 = inlined_call_operand.hbm [shape: f32[2,4,256], index: 0, kind: input, shape index: {}]   ;;  %s1904_s1 = inlined_call_operand.vmem [shape: f32[8,4], index: 1, kind: input, shape index: {}]   ;;  %s1905_s2 = inlined_call_operand.hbm [shape: f32[256,1024], index: 2, kind: input, shape index: {}]   ;;  %s1906_s3 = inlined_call_operand.hbm [shape: f32[2,8,1024], index: 3, kind: output, shape index: {}]  }
   0x1   :  { %10 = vsyncpa [#allocation3 + $0x1], 0 }
   0x2   :  { %11 = vsyncpa [#allocation6], 0 }
   0x3   :  { %12 = vsyncpa [#allocation4], 0 }
   0x4   :  { %14 = vsyncpa [#allocation4 + $0x1], 0  ;;  %s1674_s12 = smov 0   ;;  %s1676_s13 = smov 0  }
   0x5   :  { %s1678_s14 = smov 0   ;;  %s1680_s15 = smov 0  }
   0x6 LB: > { %s1695_s16 = sadd.s32 4294967295, %s1646_s15   ;;  %s1171_s17 = sadd.s32 4294967294, %s1646_s15   ;;  %s1646_s15 = sphi %s1680_s15, %s1926_s15   ;;  %s1642_s14 = sphi %s1678_s14, %s1925_s14   ;;  %s1638_s13 = sphi %s1676_s13, %s1924_s13   ;;  %s1634_s12 = sphi %s1674_s12, %s1923_s12  }
   0x7   : > { %p40_p0 = scmp.ne.s32.totalorder %s1638_s13, %s1634_s12  ;;  %p1907_p1 = scmp.eq.s32.totalorder %s1695_s16, 0 }
   0x8   : > { %p112_p3 = scmp.eq.s32.totalorder %s1171_s17, 1  ;;  %p1172_p5 = scmp.ge.s32.totalorder %s1646_s15, 1 }
   0x9   : > { %p1704_p4 = por %p1907_p1, %p40_p0  ;;  %p119_p7 = scmp.lt.s32.totalorder %s1646_s15, 3 }
   0xa   : > { %p1709_p6 = por %p112_p3, %p40_p0  ;;  %s1648_s21 = smov [#allocation5]  }
   0xb   : > { %s1910_s18 = scalar_select %p1704_p4, 1, 0 }
   0xc   : > { %s1911_s19 = scalar_select %p1709_p6, 1, 0 }
   0xd   : > { %p1714_p8 = pnand %p1172_p5, %p119_p7  ;;  %s134_s22 = sshll.u32 %s1648_s21, 4  ;;  %s1718_s22 = int_to_ptr.vmem [resolvable:$true] %s134_s22 }
   0xe   : > { %s1730_s24 = sadd.s32 1, %s1646_s15   ;;  %s27_s25 = sadd.s32 1, %s1642_s14 }
   0xf   : > { %s1912_s20 = scalar_select %p1714_p8, 1, 0 }
  0x10   : > { %p1465_p9 = pneg %p1714_p8  ;;  %s24_s26 = ssub.s32 %s1646_s15, %s1730_s24 }
  0x11   : > { %s1518_s29 = scalar_lea.hbm %s1905_s2, 32768 }
  0x12   : > { %p1725_p11 = pnand %p1465_p9, %p1907_p1  ;;  %p1519_p12 = scmp.ne.s32.totalorder %s1905_s2, %s1518_s29 }
  0x13   : > { %p1525_p5 = scmp.lt.u32.totalorder %s1518_s29, %s1905_s2 }
  0x14   : > { %p1520_p13 = pneg %p1725_p11 }
  0x16   : > { %p1521_p0 = pnand %p1520_p13, %p1519_p12 }
  0x18   : > { %p1522_p3 = pneg %p1521_p0 }
  0x1a   : > { %p1527_p7 = pnand %p1525_p5, %p1522_p3 }
  0x1c   : > { %1530 = shalt.err (!%p1527_p7)
}
  0x1d   : > { %s1531_s7 = scalar_lea.vmem %s1718_s22, 32768  ;;  %p1539_p2 = scmp.lt.s32.totalorder %s1718_s22, %s1718_s22 }
  0x1e   : > { %p1532_p9 = scmp.ne.s32.totalorder %s1718_s22, %s1531_s7  ;;  %p1540_p6 = scmp.lt.s32.totalorder %s1531_s7, %s1531_s7 }
  0x20   : > { %p1534_p10 = pnand %p1532_p9, %p1520_p13  ;;  %p1541_p4 = por %p1540_p6, %p1539_p2 }
  0x22   : > { %p1535_p1 = pneg %p1534_p10 }
  0x24   : > { %p1542_p8 = pnand %p1541_p4, %p1535_p1 }
  0x26   : > { %1545 = shalt.err (!%p1542_p8)
}
  0x27   : > { %s1649_s8 = smov 1024   ;;  %s1650_s9 = smov 64  }
  0x28   : > { %1468 = dma.hbm_to_vmem [thread:$0]  (!%p1725_p11), %s1905_s2, 32768, %s1718_s22, [#allocation6], %s1649_s8, %s1649_s8, %s1650_s9  }
  0x29   : > { %p25_p2 = scmp.eq.s32.totalorder %s24_s26, 0  ;;  %p34_p1 = scmp.ne.s32.totalorder %s1642_s14, %s1638_s13 }
  0x2a   : > { %p35_p4 = scmp.eq.s32.totalorder %s1646_s15, 0  ;;  %p1478_p6 = scmp.lt.s32.totalorder %s1646_s15, 2 }
  0x2b   : > { %s1761_s17 = scalar_select %p25_p2, %s1642_s14, %s27_s25  }
  0x2c   : > { %p36_p8 = por %p35_p4, %p34_p1  ;;  %p1914_p10 = scmp.eq.s32.totalorder %s1695_s16, 1 }
  0x2d   : > { %s148_s27 = sand.u32 1, %s1642_s14   ;;  %s1199_s28 = sshll.u32 %s1646_s15, 7 }
  0x2e   : > { %p1765_p12 = por %p1914_p10, %p34_p1  ;;  %s1175_s29 = sshll.u32 %s148_s27, 3 }
  0x2f   : > { %s1774_s4 = scalar_lea.hbm %s1903_s0, %s1199_s28  ;;  %s152_s22 = scalar_lea.vmem [#allocation2], %s1175_s29 }
  0x30   : > { %s160_s25 = sshll.u32 %s152_s22, 4  ;;  %p1776_p11 = pnand %p1478_p6, %p36_p8  ;;  %s1780_s25 = int_to_ptr.vmem [resolvable:$true] %s160_s25 }
  0x31   : > { %s149_s5 = scalar_lea.sflag [#allocation3], %s148_s27  ;;  %s1546_s6 = scalar_lea.hbm %s1774_s4, 128 }
  0x32   : > { %p1547_p13 = scmp.ne.s32.totalorder %s1774_s4, %s1546_s6  ;;  %p1548_p0 = pneg %p1776_p11 }
  0x33   : > { %s1551_s9 = scalar_lea.hbm %s1903_s0, 256  ;;  %p1552_p7 = scmp.lt.u32.totalorder %s1774_s4, %s1903_s0 }
  0x34   : > { %p1549_p3 = pnand %p1548_p0, %p1547_p13  ;;  %p1553_p9 = scmp.lt.u32.totalorder %s1551_s9, %s1546_s6 }
  0x35   : > { %p1555_p1 = scmp.lt.u32.totalorder %s1546_s6, %s1774_s4 }
  0x36   : > { %p1550_p5 = pneg %p1549_p3  ;;  %p1554_p2 = por %p1553_p9, %p1552_p7 }
  0x38   : > { %p1556_p4 = por %p1555_p1, %p1554_p2 }
  0x3a   : > { %p1557_p6 = pnand %p1556_p4, %p1550_p5 }
  0x3c   : > { %1560 = shalt.err (!%p1557_p6)
}
  0x3d   : > { %s1561_s27 = scalar_lea.vmem %s1780_s25, 128  ;;  %s1651_s28 = smov [#allocation2]  }
  0x3e   : > { %p1562_p8 = scmp.ne.s32.totalorder %s1780_s25, %s1561_s27  ;;  %s1566_s29 = sshll.u32 %s1651_s28, 4  ;;  %s1567_s29 = int_to_ptr.vmem [resolvable:$false] %s1566_s29 }
  0x3f   : > { %s1568_s23 = scalar_lea.vmem %s1567_s29, 256  ;;  %p1569_p3 = scmp.lt.s32.totalorder %s1780_s25, %s1567_s29 }
  0x40   : > { %p1564_p10 = pnand %p1562_p8, %p1548_p0  ;;  %p1570_p7 = scmp.lt.s32.totalorder %s1568_s23, %s1561_s27 }
  0x42   : > { %p1565_p13 = pneg %p1564_p10  ;;  %p1571_p9 = por %p1570_p7, %p1569_p3 }
  0x44   : > { %p1572_p2 = pnand %p1571_p9, %p1565_p13 }
  0x46   : > { %1575 = shalt.err (!%p1572_p2)
}
  0x47   : > { %1472 = dma.hbm_to_vmem [thread:$0]  (!%p1776_p11), %s1774_s4, 128, %s1780_s25, %s149_s5  }
  0x48   : > { %p1917_p5 = scmp.ne.s32.totalorder %s1912_s20, 0 }
  0x49   : > { %s1810_s30 = sand.u32 (!%p1917_p5), 1, %s1638_s13   ;;  %p1918_p0 = scmp.ne.s32.totalorder (!%p1917_p5), %s1910_s18, 0 }
  0x4a   : > { %169 = sbr.rel (%p1917_p5) target bundleno = 662 (0x296), region = 32  ;;  %s1179_s22 = sshll.u32 (!%p1917_p5), %s1810_s30, 3 }
  0x4b   : > { %s172_s6 = scalar_lea.sflag (!%p1917_p5), [#allocation3], %s1810_s30  ;;  %s1814_s7 = scalar_lea.vmem (!%p1917_p5), [#allocation2], %s1179_s22 }
  0x51   : > { %1621 = dma.done.wait (%p1918_p0), %s172_s6, 128  }
  0x52   : > { %1623 = vsyncadd (%p1918_p0), %s172_s6, 4294967168  ;;  %p1919_p11 = scmp.eq.s32.totalorder %s1695_s16, 0 }
  0x54   : > { %1625 = dma.done.wait (%p1919_p11), [#allocation6], 32768   ;;  %p1920_p1 = pmov %p1919_p11 }
  0x55   : > { %v205_v0 = vld [vmem:[#allocation5 + $0x8] sm:$0xff]  ;;  %v207_v2 = vld [vmem:[#allocation5 + $0x18] sm:$0xff]  ;;  %v204_v5 = vld [vmem:[#allocation5] sm:$0xff]  ;;  %vm751_vm0 = vcmask 1043456   ;;  %vm747_vm1 = vcmask 31744   ;;  %s1181_s4 = sshll.u32 %s1810_s30, 6 }
  0x56   : > { %1627 = vsyncadd (%p1920_p1), [#allocation6], 4294934528  ;;  %v213_v1 = vld [vmem:[#allocation5 + $0x48] sm:$0xff]  ;;  %v215_v4 = vld [vmem:[#allocation5 + $0x58] sm:$0xff]  ;;  %s201_s25 = scalar_lea.vmem [#allocation7], %s1181_s4  ;;  %s1200_s26 = sshll.u32 %s1695_s16, 10 }
  0x57   : > { %v1201_v3 = vpack.c.bf16 %v213_v1, %v205_v0  ;;  %v212_v6 = vld [vmem:[#allocation5 + $0x40] sm:$0xff]  ;;  %v1265_v7 = vpack.c.bf16 %v215_v4, %v207_v2  ;;  %v206_v9 = vld [vmem:[#allocation5 + $0x10] sm:$0xff]  ;;  %v221_v11 = vld [vmem:[#allocation5 + $0x88] sm:$0xff]  ;;  %s1091_s5 = sshll.u32 %s201_s25, 4  ;;  %s1859_s10 = scalar_lea.hbm %s1906_s3, %s1200_s26  ;;  %s1861_s5 = int_to_ptr.vmem [resolvable:$true] %s1091_s5 }
  0x58   : > { %v1203_v8 = vpack.c.bf16 %v212_v6, %v204_v5  ;;  %v214_v10 = vld [vmem:[#allocation5 + $0x50] sm:$0xff]  ;;  %v229_v13 = vld [vmem:[#allocation5 + $0xc8] sm:$0xff]  ;;  %v223_v14 = vld [vmem:[#allocation5 + $0x98] sm:$0xff]  ;;  %s1077_s16 = scalar_lea.sflag [#allocation4], %s1810_s30  ;;  %s1576_s11 = scalar_lea.vmem %s1861_s5, 1024 }
  0x59   : > { %1202 = vmatprep.subr.bf16.mxu0 %v1201_v3  ;;  %v1267_v12 = vpack.c.bf16 %v214_v10, %v206_v9  ;;  %v231_v15 = vld [vmem:[#allocation5 + $0xd8] sm:$0xff]  ;;  %1266 = vmatprep.subr.bf16.mxu1 %v1265_v7  ;;  %v1205_v16 = vpack.c.bf16 %v229_v13, %v221_v11  ;;  %v220_v18 = vld [vmem:[#allocation5 + $0x80] sm:$0xff]  ;;  %v222_v20 = vld [vmem:[#allocation5 + $0x90] sm:$0xff]  ;;  %p1577_p4 = scmp.ne.s32.totalorder %s1861_s5, %s1576_s11  ;;  %s1653_s27 = smov [#allocation7]  }
  0x5a   : > { %1204 = vmatpush1.bf16.msra.mxu0 %v1203_v8  ;;  %v1269_v17 = vpack.c.bf16 %v231_v15, %v223_v14  ;;  %v228_v19 = vld [vmem:[#allocation5 + $0xc0] sm:$0xff]  ;;  %v230_v22 = vld [vmem:[#allocation5 + $0xd0] sm:$0xff]  ;;  %v237_v23 = vld [vmem:[#allocation5 + $0x108] sm:$0xff]  ;;  %s1580_s28 = sshll.u32 %s1653_s27, 4  ;;  %s1581_s28 = int_to_ptr.vmem [resolvable:$false] %s1580_s28 }
  0x5b   : > { %1268 = vmatpush1.bf16.msra.mxu1 %v1267_v12  ;;  %v1207_v21 = vpack.c.bf16 %v228_v19, %v220_v18  ;;  %v245_v24 = vld [vmem:[#allocation5 + $0x148] sm:$0xff]  ;;  %1206 = vmatprep.subr.bf16.mxu0 %v1205_v16  ;;  %v1271_v25 = vpack.c.bf16 %v230_v22, %v222_v20  ;;  %v239_v27 = vld [vmem:[#allocation5 + $0x118] sm:$0xff]  ;;  %v236_v29 = vld [vmem:[#allocation5 + $0x100] sm:$0xff]  ;;  %p1578_p6 = pnand %p1577_p4, %p1765_p12  ;;  %s1582_s29 = scalar_lea.vmem %s1581_s28, 2048 }
  0x5c   : > { %1270 = vmatprep.subr.bf16.mxu1 %v1269_v17  ;;  %v1209_v26 = vpack.c.bf16 %v245_v24, %v237_v23  ;;  %v247_v28 = vld [vmem:[#allocation5 + $0x158] sm:$0xff]  ;;  %v244_v31 = vld [vmem:[#allocation5 + $0x140] sm:$0xff]  ;;  %v238_v32 = vld [vmem:[#allocation5 + $0x110] sm:$0xff]  ;;  %p1583_p10 = scmp.lt.s32.totalorder %s1861_s5, %s1581_s28  ;;  %p1584_p13 = scmp.lt.s32.totalorder %s1582_s29, %s1576_s11 }
  0x5d   : > { %v1273_v30 = vpack.c.bf16 %v247_v28, %v239_v27  ;;  %v246_v33 = vld [vmem:[#allocation5 + $0x150] sm:$0xff]  ;;  %v1211_v34 = vpack.c.bf16 %v244_v31, %v236_v29  ;;  %v253_v35 = vld [vmem:[#allocation5 + $0x188] sm:$0xff]  ;;  %v255_v37 = vld [vmem:[#allocation5 + $0x198] sm:$0xff]  ;;  %p1579_p8 = pneg %p1578_p6 }
  0x5e   : > { %1208 = vmatpush1.bf16.msra.mxu0 %v1207_v21  ;;  %v261_v36 = vld [vmem:[#allocation5 + $0x1c8] sm:$0xff]  ;;  %v1275_v38 = vpack.c.bf16 %v246_v33, %v238_v32  ;;  %v263_v40 = vld [vmem:[#allocation5 + $0x1d8] sm:$0xff]  ;;  %v252_v41 = vld [vmem:[#allocation5 + $0x180] sm:$0xff]  ;;  %p1585_p3 = por %p1584_p13, %p1583_p10 }
  0x5f   : > { %1272 = vmatpush1.bf16.msra.mxu1 %v1271_v25  ;;  %1210 = vmatprep.subr.bf16.mxu0 %v1209_v26  ;;  %v1213_v39 = vpack.c.bf16 %v261_v36, %v253_v35  ;;  %v260_v42 = vld [vmem:[#allocation5 + $0x1c0] sm:$0xff]  ;;  %v1277_v43 = vpack.c.bf16 %v263_v40, %v255_v37  ;;  %v254_v44 = vld [vmem:[#allocation5 + $0x190] sm:$0xff]  ;;  %v269_v46 = vld [vmem:[#allocation5 + $0x208] sm:$0xff] }
  0x60   : > { %1274 = vmatprep.subr.bf16.mxu1 %v1273_v30  ;;  %v262_v45 = vld [vmem:[#allocation5 + $0x1d0] sm:$0xff]  ;;  %v277_v47 = vld [vmem:[#allocation5 + $0x248] sm:$0xff]  ;;  %v271_v48 = vld [vmem:[#allocation5 + $0x218] sm:$0xff]  ;;  %v1215_v50 = vpack.c.bf16 %v260_v42, %v252_v41  ;;  %p1586_p7 = pnand %p1585_p3, %p1579_p8 }
  0x61   : > { %v279_v49 = vld [vmem:[#allocation5 + $0x258] sm:$0xff]  ;;  %v1279_v51 = vpack.c.bf16 %v262_v45, %v254_v44  ;;  %v1217_v52 = vpack.c.bf16 %v277_v47, %v269_v46  ;;  %v268_v53 = vld [vmem:[#allocation5 + $0x200] sm:$0xff]  ;;  %v270_v55 = vld [vmem:[#allocation5 + $0x210] sm:$0xff] }
  0x62   : > { %1212 = vmatpush1.bf16.msra.mxu0 %v1211_v34  ;;  %v276_v54 = vld [vmem:[#allocation5 + $0x240] sm:$0xff]  ;;  %v1281_v56 = vpack.c.bf16 %v279_v49, %v271_v48  ;;  %v278_v57 = vld [vmem:[#allocation5 + $0x250] sm:$0xff]  ;;  %v285_v58 = vld [vmem:[#allocation5 + $0x288] sm:$0xff] }
  0x63   : > { %1276 = vmatpush1.bf16.msra.mxu1 %v1275_v38  ;;  %1214 = vmatprep.subr.bf16.mxu0 %v1213_v39  ;;  %v293_v59 = vld [vmem:[#allocation5 + $0x2c8] sm:$0xff]  ;;  %v287_v60 = vld [vmem:[#allocation5 + $0x298] sm:$0xff]  ;;  %v1219_v62 = vpack.c.bf16 %v276_v54, %v268_v53  ;;  %v1283_v63 = vpack.c.bf16 %v278_v57, %v270_v55  ;;  %v284_v1 = vld [vmem:[#allocation5 + $0x280] sm:$0xff] }
  0x64   : > { %1278 = vmatprep.subr.bf16.mxu1 %v1277_v43  ;;  %v295_v61 = vld [vmem:[#allocation5 + $0x2d8] sm:$0xff]  ;;  %v1221_v0 = vpack.c.bf16 %v293_v59, %v285_v58  ;;  %v292_v2 = vld [vmem:[#allocation5 + $0x2c0] sm:$0xff]  ;;  %v286_v3 = vld [vmem:[#allocation5 + $0x290] sm:$0xff] }
  0x65   : > { %v1285_v4 = vpack.c.bf16 %v295_v61, %v287_v60  ;;  %v294_v5 = vld [vmem:[#allocation5 + $0x2d0] sm:$0xff]  ;;  %v301_v6 = vld [vmem:[#allocation5 + $0x308] sm:$0xff]  ;;  %v303_v8 = vld [vmem:[#allocation5 + $0x318] sm:$0xff]  ;;  %v1223_v10 = vpack.c.bf16 %v292_v2, %v284_v1 }
  0x66   : > { %1216 = vmatpush1.bf16.msra.mxu0 %v1215_v50  ;;  %v309_v7 = vld [vmem:[#allocation5 + $0x348] sm:$0xff]  ;;  %v311_v9 = vld [vmem:[#allocation5 + $0x358] sm:$0xff]  ;;  %v1287_v11 = vpack.c.bf16 %v294_v5, %v286_v3  ;;  %v300_v13 = vld [vmem:[#allocation5 + $0x300] sm:$0xff] }
  0x67   : > { %1280 = vmatpush1.bf16.msra.mxu1 %v1279_v51  ;;  %1218 = vmatprep.subr.bf16.mxu0 %v1217_v52  ;;  %v1225_v12 = vpack.c.bf16 %v309_v7, %v301_v6  ;;  %v308_v14 = vld [vmem:[#allocation5 + $0x340] sm:$0xff]  ;;  %v302_v15 = vld [vmem:[#allocation5 + $0x310] sm:$0xff]  ;;  %v1289_v16 = vpack.c.bf16 %v311_v9, %v303_v8  ;;  %v317_v18 = vld [vmem:[#allocation5 + $0x388] sm:$0xff] }
  0x68   : > { %1282 = vmatprep.subr.bf16.mxu1 %v1281_v56  ;;  %v310_v17 = vld [vmem:[#allocation5 + $0x350] sm:$0xff]  ;;  %v325_v19 = vld [vmem:[#allocation5 + $0x3c8] sm:$0xff]  ;;  %v319_v20 = vld [vmem:[#allocation5 + $0x398] sm:$0xff]  ;;  %v1227_v22 = vpack.c.bf16 %v308_v14, %v300_v13 }
  0x69   : > { %v327_v21 = vld [vmem:[#allocation5 + $0x3d8] sm:$0xff]  ;;  %v1291_v23 = vpack.c.bf16 %v310_v17, %v302_v15  ;;  %v1229_v24 = vpack.c.bf16 %v325_v19, %v317_v18  ;;  %v316_v25 = vld [vmem:[#allocation5 + $0x380] sm:$0xff]  ;;  %v318_v27 = vld [vmem:[#allocation5 + $0x390] sm:$0xff] }
  0x6a   : > { %1220 = vmatpush1.bf16.msra.mxu0 %v1219_v62  ;;  %v324_v26 = vld [vmem:[#allocation5 + $0x3c0] sm:$0xff]  ;;  %v1293_v28 = vpack.c.bf16 %v327_v21, %v319_v20  ;;  %v326_v29 = vld [vmem:[#allocation5 + $0x3d0] sm:$0xff]  ;;  %v333_v30 = vld [vmem:[#allocation5 + $0x408] sm:$0xff] }
  0x6b   : > { %1284 = vmatpush1.bf16.msra.mxu1 %v1283_v63  ;;  %1222 = vmatprep.subr.bf16.mxu0 %v1221_v0  ;;  %v341_v31 = vld [vmem:[#allocation5 + $0x448] sm:$0xff]  ;;  %v335_v32 = vld [vmem:[#allocation5 + $0x418] sm:$0xff]  ;;  %v1231_v34 = vpack.c.bf16 %v324_v26, %v316_v25  ;;  %v1295_v35 = vpack.c.bf16 %v326_v29, %v318_v27  ;;  %v332_v37 = vld [vmem:[#allocation5 + $0x400] sm:$0xff] }
  0x6c   : > { %1286 = vmatprep.subr.bf16.mxu1 %v1285_v4  ;;  %v343_v33 = vld [vmem:[#allocation5 + $0x458] sm:$0xff]  ;;  %v1233_v36 = vpack.c.bf16 %v341_v31, %v333_v30  ;;  %v340_v38 = vld [vmem:[#allocation5 + $0x440] sm:$0xff]  ;;  %v334_v39 = vld [vmem:[#allocation5 + $0x410] sm:$0xff] }
  0x6d   : > { %v1297_v40 = vpack.c.bf16 %v343_v33, %v335_v32  ;;  %v342_v41 = vld [vmem:[#allocation5 + $0x450] sm:$0xff]  ;;  %v349_v42 = vld [vmem:[#allocation5 + $0x488] sm:$0xff]  ;;  %v351_v44 = vld [vmem:[#allocation5 + $0x498] sm:$0xff]  ;;  %v1235_v46 = vpack.c.bf16 %v340_v38, %v332_v37 }
  0x6e   : > { %1224 = vmatpush1.bf16.msra.mxu0 %v1223_v10  ;;  %v357_v43 = vld [vmem:[#allocation5 + $0x4c8] sm:$0xff]  ;;  %v359_v45 = vld [vmem:[#allocation5 + $0x4d8] sm:$0xff]  ;;  %v1299_v47 = vpack.c.bf16 %v342_v41, %v334_v39  ;;  %v348_v49 = vld [vmem:[#allocation5 + $0x480] sm:$0xff] }
  0x6f   : > { %1288 = vmatpush1.bf16.msra.mxu1 %v1287_v11  ;;  %1226 = vmatprep.subr.bf16.mxu0 %v1225_v12  ;;  %v1237_v48 = vpack.c.bf16 %v357_v43, %v349_v42  ;;  %v356_v50 = vld [vmem:[#allocation5 + $0x4c0] sm:$0xff]  ;;  %v350_v51 = vld [vmem:[#allocation5 + $0x490] sm:$0xff]  ;;  %v1301_v52 = vpack.c.bf16 %v359_v45, %v351_v44  ;;  %v365_v54 = vld [vmem:[#allocation5 + $0x508] sm:$0xff] }
  0x70   : > { %1290 = vmatprep.subr.bf16.mxu1 %v1289_v16  ;;  %v358_v53 = vld [vmem:[#allocation5 + $0x4d0] sm:$0xff]  ;;  %v373_v55 = vld [vmem:[#allocation5 + $0x548] sm:$0xff]  ;;  %v367_v56 = vld [vmem:[#allocation5 + $0x518] sm:$0xff]  ;;  %v1239_v58 = vpack.c.bf16 %v356_v50, %v348_v49 }
  0x71   : > { %v375_v57 = vld [vmem:[#allocation5 + $0x558] sm:$0xff]  ;;  %v1303_v59 = vpack.c.bf16 %v358_v53, %v350_v51  ;;  %v1241_v60 = vpack.c.bf16 %v373_v55, %v365_v54  ;;  %v364_v61 = vld [vmem:[#allocation5 + $0x500] sm:$0xff]  ;;  %v366_v63 = vld [vmem:[#allocation5 + $0x510] sm:$0xff] }
  0x72   : > { %1228 = vmatpush1.bf16.msra.mxu0 %v1227_v22  ;;  %v372_v62 = vld [vmem:[#allocation5 + $0x540] sm:$0xff]  ;;  %v1305_v0 = vpack.c.bf16 %v375_v57, %v367_v56  ;;  %v374_v1 = vld [vmem:[#allocation5 + $0x550] sm:$0xff]  ;;  %v381_v2 = vld [vmem:[#allocation5 + $0x588] sm:$0xff] }
  0x73   : > { %1292 = vmatpush1.bf16.msra.mxu1 %v1291_v23  ;;  %1230 = vmatprep.subr.bf16.mxu0 %v1229_v24  ;;  %v389_v3 = vld [vmem:[#allocation5 + $0x5c8] sm:$0xff]  ;;  %v383_v4 = vld [vmem:[#allocation5 + $0x598] sm:$0xff]  ;;  %v1243_v6 = vpack.c.bf16 %v372_v62, %v364_v61  ;;  %v380_v7 = vld [vmem:[#allocation5 + $0x580] sm:$0xff]  ;;  %v1307_v8 = vpack.c.bf16 %v374_v1, %v366_v63 }
  0x74   : > { %1294 = vmatprep.subr.bf16.mxu1 %v1293_v28  ;;  %v391_v5 = vld [vmem:[#allocation5 + $0x5d8] sm:$0xff]  ;;  %v1245_v9 = vpack.c.bf16 %v389_v3, %v381_v2  ;;  %v388_v10 = vld [vmem:[#allocation5 + $0x5c0] sm:$0xff]  ;;  %v382_v11 = vld [vmem:[#allocation5 + $0x590] sm:$0xff] }
  0x75   : > { %v390_v12 = vld [vmem:[#allocation5 + $0x5d0] sm:$0xff]  ;;  %v1309_v13 = vpack.c.bf16 %v391_v5, %v383_v4  ;;  %v397_v14 = vld [vmem:[#allocation5 + $0x608] sm:$0xff]  ;;  %v399_v17 = vld [vmem:[#allocation5 + $0x618] sm:$0xff]  ;;  %v1247_v20 = vpack.c.bf16 %v388_v10, %v380_v7 }
  0x76   : > { %1232 = vmatpush1.bf16.msra.mxu0 %v1231_v34  ;;  %v405_v15 = vld [vmem:[#allocation5 + $0x648] sm:$0xff]  ;;  %v1825_v16 = vld [vmem:[%s1814_s7] sm:$0xff]  ;;  %v1311_v21 = vpack.c.bf16 %v390_v12, %v382_v11  ;;  %v396_v23 = vld [vmem:[#allocation5 + $0x600] sm:$0xff] }
  0x77   : > { %1296 = vmatpush1.bf16.msra.mxu1 %v1295_v35  ;;  %1234 = vmatprep.subr.bf16.mxu0 %v1233_v36  ;;  %v407_v18 = vld [vmem:[#allocation5 + $0x658] sm:$0xff]  ;;  %v1829_v19 = vcombine.high %v1825_v16, %v1825_v16  ;;  %v1249_v22 = vpack.c.bf16 %v405_v15, %v397_v14  ;;  %v404_v24 = vld [vmem:[#allocation5 + $0x640] sm:$0xff]  ;;  %v398_v25 = vld [vmem:[#allocation5 + $0x610] sm:$0xff] }
  0x78   : > { %1298 = vmatprep.subr.bf16.mxu1 %v1297_v40  ;;  %v1313_v26 = vpack.c.bf16 %v407_v18, %v399_v17  ;;  %v406_v27 = vld [vmem:[#allocation5 + $0x650] sm:$0xff]  ;;  %v413_v28 = vld [vmem:[#allocation5 + $0x688] sm:$0xff]  ;;  %v415_v30 = vld [vmem:[#allocation5 + $0x698] sm:$0xff]  ;;  %v1251_v32 = vpack.c.bf16 %v404_v24, %v396_v23 }
  0x79   : > { %v421_v29 = vld [vmem:[#allocation5 + $0x6c8] sm:$0xff]  ;;  %527 = vmatprep.mubr.f32.mxu0 %v1829_v19  ;;  %v423_v31 = vld [vmem:[#allocation5 + $0x6d8] sm:$0xff]  ;;  %598 = vmatprep.mubr.f32.mxu1 %v1829_v19  ;;  %v1315_v33 = vpack.c.bf16 %v406_v27, %v398_v25  ;;  %v412_v35 = vld [vmem:[#allocation5 + $0x680] sm:$0xff] }
  0x7a   : > { %1236 = vmatpush1.bf16.msra.mxu0 %v1235_v46  ;;  %v1253_v34 = vpack.c.bf16 %v421_v29, %v413_v28  ;;  %v420_v36 = vld [vmem:[#allocation5 + $0x6c0] sm:$0xff]  ;;  %v414_v37 = vld [vmem:[#allocation5 + $0x690] sm:$0xff]  ;;  %v1317_v38 = vpack.c.bf16 %v423_v31, %v415_v30  ;;  %v429_v40 = vld [vmem:[#allocation5 + $0x708] sm:$0xff] }
  0x7b   : > { %1300 = vmatpush1.bf16.msra.mxu1 %v1299_v47  ;;  %1238 = vmatprep.subr.bf16.mxu0 %v1237_v48  ;;  %v422_v39 = vld [vmem:[#allocation5 + $0x6d0] sm:$0xff]  ;;  %v437_v41 = vld [vmem:[#allocation5 + $0x748] sm:$0xff]  ;;  %v431_v42 = vld [vmem:[#allocation5 + $0x718] sm:$0xff]  ;;  %v1255_v44 = vpack.c.bf16 %v420_v36, %v412_v35 }
  0x7c   : > { %1302 = vmatprep.subr.bf16.mxu1 %v1301_v52  ;;  %v439_v43 = vld [vmem:[#allocation5 + $0x758] sm:$0xff]  ;;  %v1319_v45 = vpack.c.bf16 %v422_v39, %v414_v37  ;;  %v1257_v46 = vpack.c.bf16 %v437_v41, %v429_v40  ;;  %v428_v47 = vld [vmem:[#allocation5 + $0x700] sm:$0xff]  ;;  %v430_v49 = vld [vmem:[#allocation5 + $0x710] sm:$0xff] }
  0x7d   : > { %v436_v48 = vld [vmem:[#allocation5 + $0x740] sm:$0xff]  ;;  %v1321_v50 = vpack.c.bf16 %v439_v43, %v431_v42  ;;  %v438_v51 = vld [vmem:[#allocation5 + $0x750] sm:$0xff]  ;;  %v445_v52 = vld [vmem:[#allocation5 + $0x788] sm:$0xff] }
  0x7e   : > { %1240 = vmatpush1.bf16.msra.mxu0 %v1239_v58  ;;  %v453_v53 = vld [vmem:[#allocation5 + $0x7c8] sm:$0xff]  ;;  %v447_v54 = vld [vmem:[#allocation5 + $0x798] sm:$0xff]  ;;  %v1259_v56 = vpack.c.bf16 %v436_v48, %v428_v47  ;;  %v1323_v57 = vpack.c.bf16 %v438_v51, %v430_v49  ;;  %v446_v61 = vld [vmem:[#allocation5 + $0x790] sm:$0xff] }
  0x7f   : > { %1304 = vmatpush1.bf16.msra.mxu1 %v1303_v59  ;;  %1242 = vmatprep.subr.bf16.mxu0 %v1241_v60  ;;  %v455_v55 = vld [vmem:[#allocation5 + $0x7d8] sm:$0xff]  ;;  %v1261_v58 = vpack.c.bf16 %v453_v53, %v445_v52  ;;  %v444_v59 = vld [vmem:[#allocation5 + $0x780] sm:$0xff]  ;;  %v454_v63 = vld [vmem:[#allocation5 + $0x7d0] sm:$0xff] }
  0x80   : > { %1306 = vmatprep.subr.bf16.mxu1 %v1305_v0  ;;  %v452_v60 = vld [vmem:[#allocation5 + $0x7c0] sm:$0xff]  ;;  %v1325_v62 = vpack.c.bf16 %v455_v55, %v447_v54  ;;  %v209_v0 = vld [vmem:[#allocation5 + $0x28] sm:$0xff]  ;;  %v211_v2 = vld [vmem:[#allocation5 + $0x38] sm:$0xff]  ;;  %v1327_v5 = vpack.c.bf16 %v454_v63, %v446_v61 }
  0x81   : > { %v217_v1 = vld [vmem:[#allocation5 + $0x68] sm:$0xff]  ;;  %v219_v3 = vld [vmem:[#allocation5 + $0x78] sm:$0xff]  ;;  %v1263_v4 = vpack.c.bf16 %v452_v60, %v444_v59  ;;  %v208_v7 = vld [vmem:[#allocation5 + $0x20] sm:$0xff] }
  0x82   : > { %1244 = vmatpush1.bf16.msra.mxu0 %v1243_v6  ;;  %v1329_v6 = vpack.c.bf16 %v217_v1, %v209_v0  ;;  %v1393_v10 = vpack.c.bf16 %v219_v3, %v211_v2  ;;  %v218_v11 = vld [vmem:[#allocation5 + $0x70] sm:$0xff]  ;;  %v225_v12 = vld [vmem:[#allocation5 + $0xa8] sm:$0xff]  ;;  %v227_v14 = vld [vmem:[#allocation5 + $0xb8] sm:$0xff] }
  0x83   : > { %1308 = vmatpush1.bf16.msra.mxu1 %v1307_v8  ;;  %1246 = vmatprep.subr.bf16.mxu0 %v1245_v9  ;;  %v216_v8 = vld [vmem:[#allocation5 + $0x60] sm:$0xff]  ;;  %v210_v9 = vld [vmem:[#allocation5 + $0x30] sm:$0xff]  ;;  %v235_v15 = vld [vmem:[#allocation5 + $0xf8] sm:$0xff] }
  0x84   : > { %1310 = vmatprep.subr.bf16.mxu1 %v1309_v13  ;;  %v233_v13 = vld [vmem:[#allocation5 + $0xe8] sm:$0xff]  ;;  %v1331_v17 = vpack.c.bf16 %v216_v8, %v208_v7  ;;  %v1395_v18 = vpack.c.bf16 %v218_v11, %v210_v9  ;;  %v226_v23 = vld [vmem:[#allocation5 + $0xb0] sm:$0xff]  ;;  %v1397_v24 = vpack.c.bf16 %v235_v15, %v227_v14  ;;  %v243_v28 = vld [vmem:[#allocation5 + $0x138] sm:$0xff] }
  0x85   : > { %v234_v25 = vld [vmem:[#allocation5 + $0xf0] sm:$0xff]  ;;  %v249_v27 = vld [vmem:[#allocation5 + $0x168] sm:$0xff]  ;;  %v251_v29 = vld [vmem:[#allocation5 + $0x178] sm:$0xff] }
  0x86   : > { %1248 = vmatpush1.bf16.msra.mxu0 %v1247_v20  ;;  %v1333_v20 = vpack.c.bf16 %v233_v13, %v225_v12  ;;  %v1399_v31 = vpack.c.bf16 %v234_v25, %v226_v23  ;;  %v242_v35 = vld [vmem:[#allocation5 + $0x130] sm:$0xff]  ;;  %v1401_v36 = vpack.c.bf16 %v251_v29, %v243_v28  ;;  %v265_v39 = vld [vmem:[#allocation5 + $0x1e8] sm:$0xff]  ;;  %v259_v40 = vld [vmem:[#allocation5 + $0x1b8] sm:$0xff] }
  0x87   : > { %1312 = vmatpush1.bf16.msra.mxu1 %v1311_v21  ;;  %1250 = vmatprep.subr.bf16.mxu0 %v1249_v22  ;;  %v224_v21 = vld [vmem:[#allocation5 + $0xa0] sm:$0xff]  ;;  %v250_v37 = vld [vmem:[#allocation5 + $0x170] sm:$0xff]  ;;  %v267_v41 = vld [vmem:[#allocation5 + $0x1f8] sm:$0xff] }
  0x88   : > { %1314 = vmatprep.subr.bf16.mxu1 %v1313_v26  ;;  %v232_v22 = vld [vmem:[#allocation5 + $0xe0] sm:$0xff]  ;;  %v241_v26 = vld [vmem:[#allocation5 + $0x128] sm:$0xff]  ;;  %v1403_v43 = vpack.c.bf16 %v250_v37, %v242_v35  ;;  %v258_v47 = vld [vmem:[#allocation5 + $0x1b0] sm:$0xff]  ;;  %v1405_v48 = vpack.c.bf16 %v267_v41, %v259_v40 }
  0x89   : > { %v1335_v30 = vpack.c.bf16 %v232_v22, %v224_v21  ;;  %v266_v49 = vld [vmem:[#allocation5 + $0x1f0] sm:$0xff]  ;;  %v281_v51 = vld [vmem:[#allocation5 + $0x268] sm:$0xff]  ;;  %v275_v52 = vld [vmem:[#allocation5 + $0x238] sm:$0xff] }
  0x8a   : > { %1252 = vmatpush1.bf16.msra.mxu0 %v1251_v32  ;;  %v1337_v32 = vpack.c.bf16 %v249_v27, %v241_v26  ;;  %v283_v53 = vld [vmem:[#allocation5 + $0x278] sm:$0xff]  ;;  %v282_v60 = vld [vmem:[#allocation5 + $0x270] sm:$0xff]  ;;  %v289_v61 = vld [vmem:[#allocation5 + $0x2a8] sm:$0xff] }
  0x8b   : > { %1316 = vmatpush1.bf16.msra.mxu1 %v1315_v33  ;;  %1254 = vmatprep.subr.bf16.mxu0 %v1253_v34  ;;  %v240_v33 = vld [vmem:[#allocation5 + $0x120] sm:$0xff]  ;;  %v1409_v59 = vpack.c.bf16 %v283_v53, %v275_v52  ;;  %v291_v63 = vld [vmem:[#allocation5 + $0x2b8] sm:$0xff]  ;;  %v298_v8 = vld [vmem:[#allocation5 + $0x2f0] sm:$0xff] }
  0x8c   : > { %1318 = vmatprep.subr.bf16.mxu1 %v1317_v38  ;;  %v248_v34 = vld [vmem:[#allocation5 + $0x160] sm:$0xff]  ;;  %v257_v38 = vld [vmem:[#allocation5 + $0x1a8] sm:$0xff]  ;;  %v299_v0 = vld [vmem:[#allocation5 + $0x2f8] sm:$0xff] }
  0x8d   : > { %v1339_v42 = vpack.c.bf16 %v248_v34, %v240_v33  ;;  %v1413_v7 = vpack.c.bf16 %v299_v0, %v291_v63  ;;  %v305_v9 = vld [vmem:[#allocation5 + $0x328] sm:$0xff]  ;;  %v307_v11 = vld [vmem:[#allocation5 + $0x338] sm:$0xff]  ;;  %v314_v22 = vld [vmem:[#allocation5 + $0x370] sm:$0xff] }
  0x8e   : > { %1256 = vmatpush1.bf16.msra.mxu0 %v1255_v44  ;;  %v1341_v44 = vpack.c.bf16 %v265_v39, %v257_v38  ;;  %v315_v12 = vld [vmem:[#allocation5 + $0x378] sm:$0xff]  ;;  %v321_v23 = vld [vmem:[#allocation5 + $0x3a8] sm:$0xff]  ;;  %v330_v34 = vld [vmem:[#allocation5 + $0x3f0] sm:$0xff] }
  0x8f   : > { %1320 = vmatpush1.bf16.msra.mxu1 %v1319_v45  ;;  %1258 = vmatprep.subr.bf16.mxu0 %v1257_v46  ;;  %v256_v45 = vld [vmem:[#allocation5 + $0x1a0] sm:$0xff]  ;;  %v1417_v21 = vpack.c.bf16 %v315_v12, %v307_v11  ;;  %v323_v25 = vld [vmem:[#allocation5 + $0x3b8] sm:$0xff]  ;;  %v337_v35 = vld [vmem:[#allocation5 + $0x428] sm:$0xff] }
  0x90   : > { %1322 = vmatprep.subr.bf16.mxu1 %v1321_v50  ;;  %v264_v46 = vld [vmem:[#allocation5 + $0x1e0] sm:$0xff]  ;;  %v273_v50 = vld [vmem:[#allocation5 + $0x228] sm:$0xff]  ;;  %v331_v26 = vld [vmem:[#allocation5 + $0x3f8] sm:$0xff] }
  0x91   : > { %v1343_v54 = vpack.c.bf16 %v264_v46, %v256_v45  ;;  %v1345_v55 = vpack.c.bf16 %v281_v51, %v273_v50  ;;  %v1421_v33 = vpack.c.bf16 %v331_v26, %v323_v25  ;;  %v339_v37 = vld [vmem:[#allocation5 + $0x438] sm:$0xff]  ;;  %v346_v46 = vld [vmem:[#allocation5 + $0x470] sm:$0xff] }
  0x92   : > { %1260 = vmatpush1.bf16.msra.mxu0 %v1259_v56  ;;  %v272_v56 = vld [vmem:[#allocation5 + $0x220] sm:$0xff]  ;;  %v347_v38 = vld [vmem:[#allocation5 + $0x478] sm:$0xff] }
  0x93   : > { %1324 = vmatpush1.bf16.msra.mxu1 %v1323_v57  ;;  %1262 = vmatprep.subr.bf16.mxu0 %v1261_v58  ;;  %v280_v57 = vld [vmem:[#allocation5 + $0x260] sm:$0xff]  ;;  %v274_v58 = vld [vmem:[#allocation5 + $0x230] sm:$0xff]  ;;  %v1425_v45 = vpack.c.bf16 %v347_v38, %v339_v37  ;;  %v363_v50 = vld [vmem:[#allocation5 + $0x4f8] sm:$0xff] }
  0x94   : > { %1326 = vmatprep.subr.bf16.mxu1 %v1325_v62  ;;  %v297_v62 = vld [vmem:[#allocation5 + $0x2e8] sm:$0xff]  ;;  %v1347_v1 = vpack.c.bf16 %v280_v57, %v272_v56  ;;  %v1411_v2 = vpack.c.bf16 %v282_v60, %v274_v58  ;;  %v362_v57 = vld [vmem:[#allocation5 + $0x4f0] sm:$0xff]  ;;  %v371_v60 = vld [vmem:[#allocation5 + $0x538] sm:$0xff] }
  0x95   : > { %v1349_v3 = vpack.c.bf16 %v297_v62, %v289_v61  ;;  %v369_v58 = vld [vmem:[#allocation5 + $0x528] sm:$0xff]  ;;  %v379_v61 = vld [vmem:[#allocation5 + $0x578] sm:$0xff] }
  0x96   : > { %1264 = vmatpush1.bf16.msra.mxu0 %v1263_v4  ;;  %v288_v4 = vld [vmem:[#allocation5 + $0x2a0] sm:$0xff] }
  0x97   : > { %1328 = vmatpush1.bf16.msra.mxu1 %v1327_v5  ;;  %1330 = vmatprep.subr.bf16.mxu0 %v1329_v6  ;;  %v296_v5 = vld [vmem:[#allocation5 + $0x2e0] sm:$0xff]  ;;  %v290_v6 = vld [vmem:[#allocation5 + $0x2b0] sm:$0xff] }
  0x98   : > { %1394 = vmatprep.subr.bf16.mxu1 %v1393_v10  ;;  %v313_v10 = vld [vmem:[#allocation5 + $0x368] sm:$0xff]  ;;  %v1351_v13 = vpack.c.bf16 %v296_v5, %v288_v4  ;;  %v1415_v14 = vpack.c.bf16 %v298_v8, %v290_v6  ;;  %v1433_v4 = vpack.c.bf16 %v379_v61, %v371_v60  ;;  %v378_v5 = vld [vmem:[#allocation5 + $0x570] sm:$0xff]  ;;  %v387_v8 = vld [vmem:[#allocation5 + $0x5b8] sm:$0xff] }
  0x99   : > { %528 = vmatmul.mubr.f32.vlgmr.msra.gmra.mrb[0].mxu0 %v1825_v16  ;;  %v1353_v15 = vpack.c.bf16 %v313_v10, %v305_v9  ;;  %v385_v6 = vld [vmem:[#allocation5 + $0x5a8] sm:$0xff]  ;;  %v395_v9 = vld [vmem:[#allocation5 + $0x5f8] sm:$0xff] }
  0x9a   : > { %599 = vmatmul.mubr.f32.vlgmr.msra.gmra.mrb[0].mxu1 %v1825_v16  ;;  %1332 = vmatpush1.bf16.msra.mxu0 %v1331_v17  ;;  %v304_v17 = vld [vmem:[#allocation5 + $0x320] sm:$0xff] }
  0x9b   : > { %1396 = vmatpush1.bf16.msra.mxu1 %v1395_v18  ;;  %1334 = vmatprep.subr.bf16.mxu0 %v1333_v20  ;;  %v312_v18 = vld [vmem:[#allocation5 + $0x360] sm:$0xff]  ;;  %v306_v20 = vld [vmem:[#allocation5 + $0x330] sm:$0xff] }
  0x9c   : > { %1398 = vmatprep.subr.bf16.mxu1 %v1397_v24  ;;  %669 = vmatprep.mubr.f32.mxu0 %v1829_v19  ;;  %v329_v24 = vld [vmem:[#allocation5 + $0x3e8] sm:$0xff]  ;;  %v1355_v27 = vpack.c.bf16 %v312_v18, %v304_v17  ;;  %v1419_v28 = vpack.c.bf16 %v314_v22, %v306_v20  ;;  %v1437_v17 = vpack.c.bf16 %v395_v9, %v387_v8  ;;  %v394_v18 = vld [vmem:[#allocation5 + $0x5f0] sm:$0xff]  ;;  %v403_v22 = vld [vmem:[#allocation5 + $0x638] sm:$0xff] }
  0x9d   : > { %740 = vmatprep.mubr.f32.mxu1 %v1829_v19  ;;  %v1407_v19 = vpack.c.bf16 %v266_v49, %v258_v47  ;;  %v1357_v29 = vpack.c.bf16 %v329_v24, %v321_v23  ;;  %v353_v47 = vld [vmem:[#allocation5 + $0x4a8] sm:$0xff]  ;;  %v355_v49 = vld [vmem:[#allocation5 + $0x4b8] sm:$0xff]  ;;  %v203_v9 = vld [vmem:[%s1904_s1] sm:$0xff] }
  0x9e   : > { %1336 = vmatpush1.bf16.msra.mxu0 %v1335_v30  ;;  %v320_v30 = vld [vmem:[#allocation5 + $0x3a0] sm:$0xff]  ;;  %v1429_v56 = vpack.c.bf16 %v363_v50, %v355_v49  ;;  %v401_v20 = vld [vmem:[#allocation5 + $0x628] sm:$0xff]  ;;  %v411_v23 = vld [vmem:[#allocation5 + $0x678] sm:$0xff] }
  0x9f   : > { %1400 = vmatpush1.bf16.msra.mxu1 %v1399_v31  ;;  %1338 = vmatprep.subr.bf16.mxu0 %v1337_v32  ;;  %v328_v31 = vld [vmem:[#allocation5 + $0x3e0] sm:$0xff]  ;;  %v322_v32 = vld [vmem:[#allocation5 + $0x3b0] sm:$0xff] }
  0xa0   : > { %1402 = vmatprep.subr.bf16.mxu1 %v1401_v36  ;;  %v345_v36 = vld [vmem:[#allocation5 + $0x468] sm:$0xff]  ;;  %v1359_v39 = vpack.c.bf16 %v328_v31, %v320_v30  ;;  %v1423_v40 = vpack.c.bf16 %v330_v34, %v322_v32  ;;  %v1441_v30 = vpack.c.bf16 %v411_v23, %v403_v22  ;;  %v410_v31 = vld [vmem:[#allocation5 + $0x670] sm:$0xff]  ;;  %v419_v34 = vld [vmem:[#allocation5 + $0x6b8] sm:$0xff] }
  0xa1   : > { %v1361_v41 = vpack.c.bf16 %v345_v36, %v337_v35  ;;  %v417_v32 = vld [vmem:[#allocation5 + $0x6a8] sm:$0xff]  ;;  %v427_v35 = vld [vmem:[#allocation5 + $0x6f8] sm:$0xff] }
  0xa2   : > { %1340 = vmatpush1.bf16.msra.mxu0 %v1339_v42  ;;  %v336_v42 = vld [vmem:[#allocation5 + $0x420] sm:$0xff] }
  0xa3   : > { %1404 = vmatpush1.bf16.msra.mxu1 %v1403_v43  ;;  %1342 = vmatprep.subr.bf16.mxu0 %v1341_v44  ;;  %v344_v43 = vld [vmem:[#allocation5 + $0x460] sm:$0xff]  ;;  %v338_v44 = vld [vmem:[#allocation5 + $0x430] sm:$0xff] }
  0xa4   : > { %1406 = vmatprep.subr.bf16.mxu1 %v1405_v48  ;;  %v361_v48 = vld [vmem:[#allocation5 + $0x4e8] sm:$0xff]  ;;  %v1363_v51 = vpack.c.bf16 %v344_v43, %v336_v42  ;;  %v1427_v52 = vpack.c.bf16 %v346_v46, %v338_v44  ;;  %v1445_v42 = vpack.c.bf16 %v427_v35, %v419_v34  ;;  %v426_v43 = vld [vmem:[#allocation5 + $0x6f0] sm:$0xff]  ;;  %v435_v46 = vld [vmem:[#allocation5 + $0x738] sm:$0xff] }
  0xa5   : > { %v1365_v53 = vpack.c.bf16 %v361_v48, %v353_v47  ;;  %v433_v44 = vld [vmem:[#allocation5 + $0x728] sm:$0xff]  ;;  %v443_v47 = vld [vmem:[#allocation5 + $0x778] sm:$0xff] }
  0xa6   : > { %1344 = vmatpush1.bf16.msra.mxu0 %v1343_v54  ;;  %v352_v54 = vld [vmem:[#allocation5 + $0x4a0] sm:$0xff] }
  0xa7   : > { %1408 = vmatpush1.bf16.msra.mxu1 %v1407_v19  ;;  %1346 = vmatprep.subr.bf16.mxu0 %v1345_v55  ;;  %v360_v19 = vld [vmem:[#allocation5 + $0x4e0] sm:$0xff]  ;;  %v354_v55 = vld [vmem:[#allocation5 + $0x4b0] sm:$0xff] }
  0xa8   : > { %1410 = vmatprep.subr.bf16.mxu1 %v1409_v59  ;;  %v377_v59 = vld [vmem:[#allocation5 + $0x568] sm:$0xff]  ;;  %v1367_v62 = vpack.c.bf16 %v360_v19, %v352_v54  ;;  %v1431_v63 = vpack.c.bf16 %v362_v57, %v354_v55  ;;  %v1449_v54 = vpack.c.bf16 %v443_v47, %v435_v46  ;;  %v442_v19 = vld [vmem:[#allocation5 + $0x770] sm:$0xff]  ;;  %v451_v57 = vld [vmem:[#allocation5 + $0x7b8] sm:$0xff] }
  0xa9   : > { %v1369_v0 = vpack.c.bf16 %v377_v59, %v369_v58  ;;  %v449_v55 = vld [vmem:[#allocation5 + $0x7a8] sm:$0xff]  ;;  %v459_v58 = vld [vmem:[#allocation5 + $0x7f8] sm:$0xff] }
  0xaa   : > { %1348 = vmatpush1.bf16.msra.mxu0 %v1347_v1  ;;  %v368_v1 = vld [vmem:[#allocation5 + $0x520] sm:$0xff] }
  0xab   : > { %1412 = vmatpush1.bf16.msra.mxu1 %v1411_v2  ;;  %1350 = vmatprep.subr.bf16.mxu0 %v1349_v3  ;;  %v376_v2 = vld [vmem:[#allocation5 + $0x560] sm:$0xff]  ;;  %v370_v3 = vld [vmem:[#allocation5 + $0x530] sm:$0xff] }
  0xac   : > { %1414 = vmatprep.subr.bf16.mxu1 %v1413_v7  ;;  %v393_v7 = vld [vmem:[#allocation5 + $0x5e8] sm:$0xff]  ;;  %v1371_v10 = vpack.c.bf16 %v376_v2, %v368_v1  ;;  %v1435_v11 = vpack.c.bf16 %v378_v5, %v370_v3  ;;  %v450_v1 = vld [vmem:[#allocation5 + $0x7b0] sm:$0xff]  ;;  %v1652_v5 = vmov 0.0  }
  0xad   : > { %v1373_v12 = vpack.c.bf16 %v393_v7, %v385_v6  ;;  %v458_v2 = vld [vmem:[#allocation5 + $0x7f0] sm:$0xff] }
  0xae   : > { %1352 = vmatpush1.bf16.msra.mxu0 %v1351_v13  ;;  %v384_v13 = vld [vmem:[#allocation5 + $0x5a0] sm:$0xff] }
  0xaf   : > { %1416 = vmatpush1.bf16.msra.mxu1 %v1415_v14  ;;  %1354 = vmatprep.subr.bf16.mxu0 %v1353_v15  ;;  %v392_v14 = vld [vmem:[#allocation5 + $0x5e0] sm:$0xff]  ;;  %v386_v15 = vld [vmem:[#allocation5 + $0x5b0] sm:$0xff] }
  0xb0   : > { %1418 = vmatprep.subr.bf16.mxu1 %v1417_v21  ;;  %v409_v21 = vld [vmem:[#allocation5 + $0x668] sm:$0xff]  ;;  %v1375_v24 = vpack.c.bf16 %v392_v14, %v384_v13  ;;  %v1439_v25 = vpack.c.bf16 %v394_v18, %v386_v15 }
  0xb1   : > { %v1377_v26 = vpack.c.bf16 %v409_v21, %v401_v20 }
  0xb2   : > { %1356 = vmatpush1.bf16.msra.mxu0 %v1355_v27  ;;  %v400_v27 = vld [vmem:[#allocation5 + $0x620] sm:$0xff] }
  0xb3   : > { %1420 = vmatpush1.bf16.msra.mxu1 %v1419_v28  ;;  %1358 = vmatprep.subr.bf16.mxu0 %v1357_v29  ;;  %v408_v28 = vld [vmem:[#allocation5 + $0x660] sm:$0xff]  ;;  %v402_v29 = vld [vmem:[#allocation5 + $0x630] sm:$0xff] }
  0xb4   : > { %1422 = vmatprep.subr.bf16.mxu1 %v1421_v33  ;;  %v425_v33 = vld [vmem:[#allocation5 + $0x6e8] sm:$0xff]  ;;  %v1379_v36 = vpack.c.bf16 %v408_v28, %v400_v27  ;;  %v1443_v37 = vpack.c.bf16 %v410_v31, %v402_v29 }
  0xb5   : > { %v1381_v38 = vpack.c.bf16 %v425_v33, %v417_v32 }
  0xb6   : > { %1360 = vmatpush1.bf16.msra.mxu0 %v1359_v39  ;;  %v416_v39 = vld [vmem:[#allocation5 + $0x6a0] sm:$0xff] }
  0xb7   : > { %1424 = vmatpush1.bf16.msra.mxu1 %v1423_v40  ;;  %1362 = vmatprep.subr.bf16.mxu0 %v1361_v41  ;;  %v424_v40 = vld [vmem:[#allocation5 + $0x6e0] sm:$0xff]  ;;  %v418_v41 = vld [vmem:[#allocation5 + $0x6b0] sm:$0xff] }
  0xb8   : > { %1426 = vmatprep.subr.bf16.mxu1 %v1425_v45  ;;  %v441_v45 = vld [vmem:[#allocation5 + $0x768] sm:$0xff]  ;;  %v1383_v48 = vpack.c.bf16 %v424_v40, %v416_v39  ;;  %v1447_v49 = vpack.c.bf16 %v426_v43, %v418_v41 }
  0xb9   : > { %v1385_v50 = vpack.c.bf16 %v441_v45, %v433_v44 }
  0xba   : > { %1364 = vmatpush1.bf16.msra.mxu0 %v1363_v51  ;;  %v432_v51 = vld [vmem:[#allocation5 + $0x720] sm:$0xff] }
  0xbb   : > { %1428 = vmatpush1.bf16.msra.mxu1 %v1427_v52  ;;  %1366 = vmatprep.subr.bf16.mxu0 %v1365_v53  ;;  %v440_v52 = vld [vmem:[#allocation5 + $0x760] sm:$0xff]  ;;  %v434_v53 = vld [vmem:[#allocation5 + $0x730] sm:$0xff] }
  0xbc   : > { %1430 = vmatprep.subr.bf16.mxu1 %v1429_v56  ;;  %v457_v56 = vld [vmem:[#allocation5 + $0x7e8] sm:$0xff]  ;;  %v1387_v59 = vpack.c.bf16 %v440_v52, %v432_v51  ;;  %v1451_v60 = vpack.c.bf16 %v442_v19, %v434_v53 }
  0xbd   : > { %v1389_v61 = vpack.c.bf16 %v457_v56, %v449_v55 }
  0xbe   : > { %1368 = vmatpush1.bf16.msra.mxu0 %v1367_v62  ;;  %v448_v62 = vld [vmem:[#allocation5 + $0x7a0] sm:$0xff] }
  0xbf   : > { %1432 = vmatpush1.bf16.msra.mxu1 %v1431_v63  ;;  %1370 = vmatprep.subr.bf16.mxu0 %v1369_v0  ;;  %v456_v63 = vld [vmem:[#allocation5 + $0x7e0] sm:$0xff]  ;;  %v1453_v0 = vpack.c.bf16 %v459_v58, %v451_v57 }
  0xc0   : > { %1434 = vmatprep.subr.bf16.mxu1 %v1433_v4  ;;  %v1391_v3 = vpack.c.bf16 %v456_v63, %v448_v62  ;;  %v1455_v4 = vpack.c.bf16 %v458_v2, %v450_v1 }
  0xc2   : > { %1372 = vmatpush1.bf16.msra.mxu0 %v1371_v10 }
  0xc3   : > { %1436 = vmatpush1.bf16.msra.mxu1 %v1435_v11  ;;  %1374 = vmatprep.subr.bf16.mxu0 %v1373_v12 }
  0xc4   : > { %1438 = vmatprep.subr.bf16.mxu1 %v1437_v17 }
  0xc6   : > { %1376 = vmatpush1.bf16.msra.mxu0 %v1375_v24 }
  0xc7   : > { %1440 = vmatpush1.bf16.msra.mxu1 %v1439_v25  ;;  %1378 = vmatprep.subr.bf16.mxu0 %v1377_v26 }
  0xc8   : > { %1442 = vmatprep.subr.bf16.mxu1 %v1441_v30 }
  0xca   : > { %1380 = vmatpush1.bf16.msra.mxu0 %v1379_v36 }
  0xcb   : > { %1444 = vmatpush1.bf16.msra.mxu1 %v1443_v37  ;;  %1382 = vmatprep.subr.bf16.mxu0 %v1381_v38 }
  0xcc   : > { %1446 = vmatprep.subr.bf16.mxu1 %v1445_v42 }
  0xce   : > { %1384 = vmatpush1.bf16.msra.mxu0 %v1383_v48 }
  0xcf   : > { %1448 = vmatpush1.bf16.msra.mxu1 %v1447_v49  ;;  %1386 = vmatprep.subr.bf16.mxu0 %v1385_v50 }
  0xd0   : > { %1450 = vmatprep.subr.bf16.mxu1 %v1449_v54 }
  0xd2   : > { %1388 = vmatpush1.bf16.msra.mxu0 %v1387_v59 }
  0xd3   : > { %1452 = vmatpush1.bf16.msra.mxu1 %v1451_v60  ;;  %1390 = vmatprep.subr.bf16.mxu0 %v1389_v61 }
  0xd4   : > { %1454 = vmatprep.subr.bf16.mxu1 %v1453_v0 }
  0xd6   : > { %1392 = vmatpush1.bf16.msra.mxu0 %v1391_v3 }
  0xd7   : > { %1456 = vmatpush1.bf16.msra.mxu1 %v1455_v4 }
  0xd9   : > { %670 = vmatmul.mubr.f32.vlgmr.msra.gmra.mrb[2].mxu0 %v1825_v16 }
  0xda   : > { %741 = vmatmul.mubr.f32.vlgmr.msra.gmra.mrb[2].mxu1 %v1825_v16  ;;  %840 = vmatprep.mubr.f32.mxu0 %v1652_v5 }
  0xdb   : > { %911 = vmatprep.mubr.f32.mxu1 %v1652_v5 }
 0x16c   : > { %v529_v6 = vpop.f32.mrb[0].mxu0 }
 0x16d   : > { %v600_v7 = vpop.f32.mrb[0].mxu1  ;;  %v531_v8 = vpop.f32.mrb[1].mxu0 }
 0x16e   : > { %v602_v10 = vpop.f32.mrb[1].mxu1  ;;  %1182 = vmatprep.subr.msk.mxu0 %vm751_vm0, %v531_v8 }
 0x16f   : > { %1185 = vmatprep.subr.msk.mxu1 %vm751_vm0, %v602_v10  ;;  %1183 = vmatpush1.msk.msra.mxu0 %vm751_vm0, %v529_v6 }
 0x170   : > { %1186 = vmatpush1.msk.msra.mxu1 %vm751_vm0, %v600_v7  ;;  %1184 = vmatmul.mubr.msk.f32.vlgmr.msra.gmra.mrb[4].mxu0 %vm747_vm1, %v203_v9 }
 0x171   : > { %1187 = vmatmul.mubr.msk.f32.vlgmr.msra.gmra.mrb[4].mxu1 %vm747_vm1, %v203_v9  ;;  %982 = vmatprep.mubr.f32.mxu0 %v1652_v5 }
 0x172   : > { %1053 = vmatprep.mubr.f32.mxu1 %v1652_v5 }
 0x1ac   : > { %v671_v16 = vpop.f32.mrb[2].mxu0 }
 0x1ad   : > { %v742_v11 = vpop.f32.mrb[2].mxu1  ;;  %v673_v12 = vpop.f32.mrb[3].mxu0 }
 0x1ae   : > { %v744_v13 = vpop.f32.mrb[3].mxu1  ;;  %1188 = vmatprep.subr.msk.mxu0 %vm751_vm0, %v673_v12 }
 0x1af   : > { %1191 = vmatprep.subr.msk.mxu1 %vm751_vm0, %v744_v13  ;;  %1189 = vmatpush1.msk.msra.mxu0 %vm751_vm0, %v671_v16 }
 0x1b0   : > { %1192 = vmatpush1.msk.msra.mxu1 %vm751_vm0, %v742_v11  ;;  %1190 = vmatmul.mubr.msk.f32.vlgmr.msra.gmra.mrb[6].mxu0 %vm747_vm1, %v203_v9 }
 0x1b1   : > { %1193 = vmatmul.mubr.msk.f32.vlgmr.msra.gmra.mrb[6].mxu1 %vm747_vm1, %v203_v9 }
 0x243   : > { %v842_v14 = vpop.f32.mrb[4].mxu0 }
 0x244   : > { %v1060_v15 = vmax.f32 %v842_v14, 0.0  ;;  %v913_v17 = vpop.f32.mrb[4].mxu1  ;;  %v844_v18 = vpop.f32.mrb[5].mxu0 }
 0x245   : > { %v1062_v20 = vmax.f32 %v913_v17, 0.0  ;;  %v1061_v21 = vmax.f32 %v844_v18, 0.0  ;;  %v915_v22 = vpop.f32.mrb[5].mxu1 }
 0x246   : > { %1068 = vst [vmem:[%s201_s25] sm:$0xff] %v1060_v15  ;;  %v1063_v23 = vmax.f32 %v915_v22, 0.0 }
 0x247   : > { %1070 = vst [vmem:[%s201_s25 + $0x10] sm:$0xff] %v1062_v20  ;;  %1069 = vst [vmem:[%s201_s25 + $0x8] sm:$0xff] %v1061_v21 }
 0x248   : > { %1071 = vst [vmem:[%s201_s25 + $0x18] sm:$0xff] %v1063_v23 }
 0x283   : > { %v984_v24 = vpop.f32.mrb[6].mxu0 }
 0x284   : > { %v1064_v25 = vmax.f32 %v984_v24, 0.0  ;;  %v1055_v26 = vpop.f32.mrb[6].mxu1  ;;  %v986_v27 = vpop.f32.mrb[7].mxu0 }
 0x285   : > { %v1066_v28 = vmax.f32 %v1055_v26, 0.0  ;;  %v1065_v29 = vmax.f32 %v986_v27, 0.0  ;;  %v1057_v30 = vpop.f32.mrb[7].mxu1 }
 0x286   : > { %1072 = vst [vmem:[%s201_s25 + $0x20] sm:$0xff] %v1064_v25  ;;  %v1067_v31 = vmax.f32 %v1057_v30, 0.0 }
 0x287   : > { %1074 = vst [vmem:[%s201_s25 + $0x30] sm:$0xff] %v1066_v28  ;;  %1073 = vst [vmem:[%s201_s25 + $0x28] sm:$0xff] %v1065_v29 }
 0x288   : > { %1075 = vst [vmem:[%s201_s25 + $0x38] sm:$0xff] %v1067_v31 }
 0x289   : > { %1589 = shalt.err (!%p1586_p7)
}
 0x28a   : > { %s1590_s23 = scalar_lea.hbm %s1859_s10, 1024  ;;  %s1594_s6 = scalar_lea.hbm %s1906_s3, 2048 }
 0x28b   : > { %p1591_p9 = scmp.ne.s32.totalorder %s1859_s10, %s1590_s23  ;;  %p1595_p0 = scmp.lt.u32.totalorder %s1859_s10, %s1906_s3 }
 0x28c   : > { %p1596_p11 = scmp.lt.u32.totalorder %s1594_s6, %s1590_s23  ;;  %p1598_p4 = scmp.lt.u32.totalorder %s1590_s23, %s1859_s10 }
 0x28d   : > { %p1592_p2 = pnand %p1591_p9, %p1765_p12 }
 0x28e   : > { %p1597_p1 = por %p1596_p11, %p1595_p0 }
 0x28f   : > { %p1593_p5 = pneg %p1592_p2 }
 0x290   : > { %p1599_p6 = por %p1598_p4, %p1597_p1 }
 0x292   : > { %p1600_p8 = pnand %p1599_p6, %p1593_p5 }
 0x294   : > { %1603 = shalt.err (!%p1600_p8)
}
 0x295   : > { %1463 = dma.vmem_to_hbm [thread:$0]  (%p1765_p12), %s1861_s5, 1024, %s1859_s10, %s1077_s16  }
 0x296 PF: > { %s1103_s20 = sand.u32 1, %s1634_s12   ;;  %p1921_p10 = scmp.ne.s32.totalorder %s1911_s19, 0 }
 0x297   : > { %p1922_p13 = scmp.ge.s32.totalorder %s1646_s15, 2  ;;  %s1104_s4 = scalar_lea.sflag [#allocation4], %s1103_s20 }
 0x299   : > { %p1474_p3 = pnand %p1922_p13, %p1921_p10 }
 0x29b   : > { %1629 = dma.done.wait (!%p1474_p3), %s1104_s4, 1024  }
 0x29c   : > { %1631 = vsyncadd (!%p1474_p3), %s1104_s4, 4294966272  ;;  %p17_p7 = scmp.ge.s32.totalorder %s1730_s24, 4   ;;  %s1923_s12 = smov %s1638_s13 }
 0x29d   : > { %s1924_s13 = smov %s1642_s14  ;;  %s1925_s14 = smov %s1761_s17 }
 0x29e   : > { %s1926_s15 = smov %s1730_s24  ;;  %19 = sbr.rel (!%p17_p7) target bundleno = 6 (0x6), region = 81 }
 0x2a5   :  { %1109 = vsyncpa [#allocation3], 1 }
 0x2a6   :  { %1111 = vsyncpa [#allocation3 + $0x1], 1 }
 0x2a7   :  { %1112 = vsyncpa [#allocation6], 1 }
 0x2a8   :  { %1113 = vsyncpa [#allocation4], 1 }
 0x2a9   :  { %1115 = vsyncpa [#allocation4 + $0x1], 1 }

</bundles_post_ra>
